<compile_context>
chip_gen: v7x
topology: tpu7x:2x2x1
jax: 0.10.0
libtpu: 0.0.40
codegen_flags: <defaults>
</compile_context>

<pallas_src>
from functools import partial

import jax
import jax.numpy as jnp
from jax.experimental import pallas as pl
from jax.experimental.pallas import tpu as pltpu

LANE = 128


def _round_up(d, m=LANE):
    return ((d + m - 1) // m) * m


# ---------------------- generation-aware VMEM / tile budget ------------------ #
def _vmem_budget_bytes():
    """~75% of per-core VMEM: ~96 MiB on v5e/v6e (128 MiB), ~48 MiB on v7x (64 MiB)."""
    try:
        cap = int(pltpu.get_tpu_info().vmem_capacity_bytes)
    except Exception:
        cap = 64 << 20                      # conservative fallback (v7x per-TC)
    return int(cap * 3 // 4)


_VMEM_LIMIT = _vmem_budget_bytes()
_ROW_CAP = 1024 if _VMEM_LIMIT >= (80 << 20) else 512


def _largest_div_tile(n, cap):
    """Largest multiple of 128 that divides n (n is a multiple of 128) and is <= cap."""
    t = min(cap, n)
    t -= t % LANE
    t = max(t, LANE)
    while n % t:
        t -= LANE
    return t


def _row_tile(m):
    """Row tile for padded row count m; keep >=2 grid steps for megacore sharding."""
    tm = _largest_div_tile(m, _ROW_CAP)
    if tm == m and m >= 16 and (m // 2) % 8 == 0:
        tm = m // 2
    return tm


# ----------------- optional single-buffering of resident blocks -------------- #
_BUFFERED1_OK = None


def _buffered1_supported():
    """Probe pipeline_mode=pl.Buffered(1) once; fall back to default buffering."""
    global _BUFFERED1_OK
    if _BUFFERED1_OK is None:
        def _copy(x_ref, o_ref):
            o_ref[...] = x_ref[...]
        try:
            spec = pl.BlockSpec((8, LANE), lambda i: (0, 0),
                                pipeline_mode=pl.Buffered(buffer_count=1))
            y = pl.pallas_call(
                _copy,
                out_shape=jax.ShapeDtypeStruct((8, LANE), jnp.float32),
                grid=(1,),
                in_specs=[spec],
                out_specs=pl.BlockSpec((8, LANE), lambda i: (0, 0)),
            )(jnp.zeros((8, LANE), jnp.float32))
            jax.block_until_ready(y)
            _BUFFERED1_OK = True
        except Exception:
            _BUFFERED1_OK = False
    return _BUFFERED1_OK


def _resident_spec(block_shape, index_map):
    """BlockSpec for blocks whose index_map never changes: single-buffer if supported."""
    if _buffered1_supported():
        return pl.BlockSpec(block_shape, index_map,
                            pipeline_mode=pl.Buffered(buffer_count=1))
    return pl.BlockSpec(block_shape, index_map)


# --------------------------- Pallas kernels: linear -------------------------- #
def _linear_kernel(x_ref, w_ref, b_ref, h_ref):
    # h = x @ W + b : bf16 operands (cast in-kernel), f32 accumulation on the MXU.
    x = x_ref[...].astype(jnp.bfloat16)
    h = jnp.dot(x, w_ref[...], preferred_element_type=jnp.float32)
    h_ref[...] = (h + b_ref[...]).astype(h_ref.dtype)


def _linear_dual_kernel(x1_ref, x2_ref, w_ref, b_ref, h_ref, *, fp):
    # Skip-path linear: [x1@W+b | x2@W+b] written straight into one lane-dense
    # (tm, 2*Fp) output -> no wrapper-side concatenates.
    w = w_ref[...]
    b = b_ref[...]
    h1 = jnp.dot(x1_ref[...].astype(jnp.bfloat16), w,
                 preferred_element_type=jnp.float32) + b
    h2 = jnp.dot(x2_ref[...].astype(jnp.bfloat16), w,
                 preferred_element_type=jnp.float32) + b
    h_ref[:, :fp] = h1.astype(h_ref.dtype)
    h_ref[:, fp:] = h2.astype(h_ref.dtype)


def linear_transform(x, w_bf16, b_f32):
    """h = x @ W + b.  x: (M, Fin_pad) any float dtype.  bf16 out."""
    m, fin = x.shape
    fp = w_bf16.shape[1]
    tm = _row_tile(m)
    return pl.pallas_call(
        _linear_kernel,
        out_shape=jax.ShapeDtypeStruct((m, fp), jnp.bfloat16),
        grid=(m // tm,),
        in_specs=[
            pl.BlockSpec((tm, fin), lambda i: (i, 0)),       # x row tile (streamed)
            _resident_spec((fin, fp), lambda i: (0, 0)),     # W (resident, 1 buffer)
            _resident_spec((1, fp), lambda i: (0, 0)),       # bias (resident, 1 buffer)
        ],
        out_specs=pl.BlockSpec((tm, fp), lambda i: (i, 0)),
        compiler_params=pltpu.CompilerParams(
            dimension_semantics=("parallel",),
            vmem_limit_bytes=_VMEM_LIMIT),
    )(x, w_bf16, b_f32.reshape(1, fp))


def linear_transform_dual(x1, x2, w_bf16, b_f32):
    """[x1@W+b | x2@W+b] -> (M, 2*Fp) bf16, single pallas_call, no concatenates."""
    m, fin = x1.shape
    fp = w_bf16.shape[1]
    tm = _row_tile(m)
    kernel = partial(_linear_dual_kernel, fp=fp)
    return pl.pallas_call(
        kernel,
        out_shape=jax.ShapeDtypeStruct((m, 2 * fp), jnp.bfloat16),
        grid=(m // tm,),
        in_specs=[
            pl.BlockSpec((tm, fin), lambda i: (i, 0)),
            pl.BlockSpec((tm, fin), lambda i: (i, 0)),
            _resident_spec((fin, fp), lambda i: (0, 0)),
            _resident_spec((1, fp), lambda i: (0, 0)),
        ],
        out_specs=pl.BlockSpec((tm, 2 * fp), lambda i: (i, 0)),
        compiler_params=pltpu.CompilerParams(
            dimension_semantics=("parallel",),
            vmem_limit_bytes=_VMEM_LIMIT),
    )(x1, x2, w_bf16, b_f32.reshape(1, fp))


# ------------------ Pallas kernel: propagation + Wiener bank ----------------- #
def _wiener_prop_kernel(adj_ref, dinv_ref, h_ref, alpha_ref, o_ref, acc_ref,
                        *, gammas, dual, fp):
    k = pl.program_id(1)

    @pl.when(k == 0)
    def _():
        acc_ref[...] = jnp.zeros_like(acc_ref)

    # Streamed matmul: adj row-tile (bf16) x h K-block (bf16) -> f32 accumulator.
    acc_ref[...] += jnp.dot(adj_ref[...], h_ref[...],
                            preferred_element_type=jnp.float32)

    @pl.when(k == pl.num_programs(1) - 1)
    def _():
        p_all = acc_ref[...]                       # (tm, Ftot) f32
        dinv = dinv_ref[...]                       # (tm, 1)   f32

        def bank(p):
            # q = avg_adj @ h == (adj @ h) * deg_inv (row-normalized adjacency).
            q = p * dinv
            gmin, gmax = min(gammas), max(gammas)
            if gmin > -1.0:
                # y(g) = (p + g q)/(1+g) = p + g/(1+g) (q-p) is monotone in g
                # for g > -1 -> the max over the bank needs only two evals.
                y_hi = p + (gmax / (1.0 + gmax)) * (q - p)
                if gmin == gmax:
                    return y_hi
                y_lo = p + (gmin / (1.0 + gmin)) * (q - p)
                return jnp.where(q >= p, y_hi, y_lo)
            out = None                              # fallback: explicit bank
            for g in gammas:
                y = (p + g * q) * (1.0 / (1.0 + g))
                out = y if out is None else jnp.maximum(out, y)
            return out

        if dual:
            d = bank(p_all[:, :fp]) + bank(p_all[:, fp:])   # d1 + d2 (skip layer)
        else:
            d = bank(p_all)

        alpha = alpha_ref[0]
        o_ref[...] = jnp.where(d >= 0.0, d, alpha * d).astype(o_ref.dtype)   # PReLU


def _prop_tiles(n_pad, ftot, fp, out_bytes):
    """Pick (tm, tk) so the per-step footprint fits the generation VMEM budget."""
    tm = _row_tile(n_pad)

    def footprint(tm_, tk_):
        adj = tm_ * tk_ * 2 * 2                                  # bf16, double buffered
        h = tk_ * ftot * 2 * (1 if tk_ == n_pad else 2)          # bf16 h block
        acc = tm_ * ftot * 4                                     # f32 accumulator
        out = tm_ * fp * out_bytes * 2
        dinv = tm_ * 4 * 2
        return adj + h + acc + out + dinv

    tk = n_pad
    while footprint(tm, tk) > _VMEM_LIMIT and tk > LANE:
        tk = _largest_div_tile(n_pad, max(LANE, tk // 2))
    while footprint(tm, tk) > _VMEM_LIMIT and tm > LANE:
        tm = _largest_div_tile(n_pad, max(LANE, tm // 2))
    return tm, tk


def wiener_propagate(h, adj_bf16, deg_inv, alpha, gammas, *, dual, out_dtype):
    """Propagation + gamma filter bank (+PReLU).  h: (N_pad, Fp) or (N_pad, 2*Fp) bf16."""
    n_pad = adj_bf16.shape[0]
    ftot = h.shape[1]
    fp = ftot // 2 if dual else ftot
    tm, tk = _prop_tiles(n_pad, ftot, fp, jnp.dtype(out_dtype).itemsize)

    if tk == n_pad:
        # h fully resident across the grid -> single buffer.
        h_spec = _resident_spec((tk, ftot), lambda i, k: (0, 0))
    else:
        # K-tiled h stream (large graphs / v7x 64 MiB VMEM).
        h_spec = pl.BlockSpec((tk, ftot), lambda i, k: (k, 0))

    kernel = partial(_wiener_prop_kernel,
                     gammas=tuple(float(g) for g in gammas), dual=dual, fp=fp)
    return pl.pallas_call(
        kernel,
        out_shape=jax.ShapeDtypeStruct((n_pad, fp), out_dtype),
        grid=(n_pad // tm, n_pad // tk),
        in_specs=[
            pl.BlockSpec((tm, tk), lambda i, k: (i, k)),          # adj tile (streamed)
            pl.BlockSpec((tm, 1), lambda i, k: (i, 0)),           # 1/deg row tile
            h_spec,                                               # h
            pl.BlockSpec(memory_space=pltpu.MemorySpace.SMEM),    # PReLU alpha (scalar)
        ],
        out_specs=pl.BlockSpec((tm, fp), lambda i, k: (i, 0)),
        scratch_shapes=[pltpu.VMEM((tm, ftot), jnp.float32)],
        compiler_params=pltpu.CompilerParams(
            dimension_semantics=("parallel", "arbitrary"),
            vmem_limit_bytes=_VMEM_LIMIT),
    )(adj_bf16, deg_inv, h, jnp.asarray([alpha], jnp.float32))


# --------------------------------- JAX glue ---------------------------------- #
def _noisy(x, key, beta):
    # torch .std() uses the unbiased estimator (correction=1); applied BEFORE padding.
    coef = jnp.std(x, ddof=1) * beta
    return x + coef * jax.random.normal(key, x.shape, x.dtype)


def _pad_to(x, rows, cols):
    r, c = x.shape
    return jnp.pad(x, ((0, rows - r), (0, cols - c)))


def wdecoder_forward(params, enc, adj_bf16, deg_inv, key, *,
                     num_nodes, beta=1.0, skip=True):
    """Mirrors WDecoder.forward / .fast with dense adjacency (norm=None, drop=0)."""
    num_layer = len(params)
    n_pad = adj_bf16.shape[0]
    keys = jax.random.split(key, num_layer)

    fin0_pad = params[0][0].shape[0]
    dec = _pad_to(_noisy(enc[-1], keys[0], beta), n_pad, fin0_pad)   # dec_list[0]

    for layer in range(num_layer):
        w, b, alpha, gammas, _ = params[layer]
        fin_pad = w.shape[0]
        # Intermediate layers stay bf16 end-to-end; only the final layer emits f32.
        out_dtype = jnp.float32 if layer == num_layer - 1 else jnp.bfloat16
        if layer == 0 or not skip:
            h = linear_transform(dec, w, b)                               # (N_pad, Fp)
            dec = wiener_propagate(h, adj_bf16, deg_inv, alpha, gammas,
                                   dual=False, out_dtype=out_dtype)
        else:
            adv_enc = _pad_to(_noisy(enc[-(layer + 1)], keys[layer], beta),
                              n_pad, fin_pad)
            h = linear_transform_dual(adv_enc, dec, w, b)                 # (N_pad, 2*Fp)
            dec = wiener_propagate(h, adj_bf16, deg_inv, alpha, gammas,
                                   dual=True, out_dtype=out_dtype)
        # dropout(p=0) == identity; norm=None == identity.
    return dec[:num_nodes, :params[-1][4]]          # strip row/lane padding


def init_params(key, in_dim, hid_dim, out_dim, num_layer, gamma):
    emb = [in_dim] + [hid_dim] * (num_layer - 1) + [out_dim]
    params = []
    for i in range(num_layer):
        key, kw, kb = jax.random.split(key, 3)
        fin, fout = emb[i], emb[i + 1]
        w = jax.random.normal(kw, (fin, fout), jnp.float32) / jnp.sqrt(fin)
        b = jax.random.normal(kb, (fout,), jnp.float32) * 0.01
        # Lane-dense zero padding: padded feature columns propagate as exact 0.
        w_pad = jnp.zeros((_round_up(fin), _round_up(fout)), jnp.float32)
        w_pad = w_pad.at[:fin, :fout].set(w)
        b_pad = jnp.zeros((_round_up(fout),), jnp.float32).at[:fout].set(b)
        alpha = 0.25                                 # torch PReLU default
        params.append((w_pad.astype(jnp.bfloat16), b_pad, alpha,
                       tuple(float(g) for g in gamma), fout))
    return params


# ----------------------------------- main ------------------------------------ #
if __name__ == "__main__":
    N, IN_DIM, HID_DIM, OUT_DIM = 16, 32, 32, 16
    NUM_LAYER = 2
    GAMMA = (0.5, 1.0)
    BETA = 1.0

    root = jax.random.PRNGKey(0)
    k_enc1, k_enc2, k_edges, k_w, k_noise, k_par = jax.random.split(root, 6)

    # encoder outputs: enc[-1] feeds layer 0 (in_dim), enc[-2] is the skip input.
    enc = [
        jax.random.normal(k_enc1, (N, HID_DIM), jnp.float32),   # enc[-2]
        jax.random.normal(k_enc2, (N, IN_DIM), jnp.float32),    # enc[-1]
    ]

    # Random sparse graph -> dense adjacency (glue); avg_adj analogue = adj/deg.
    E = 48
    src = jax.random.randint(k_edges, (E,), 0, N)
    dst = jax.random.randint(jax.random.fold_in(k_edges, 1), (E,), 0, N)
    edge_weight = jnp.abs(jax.random.normal(k_w, (E,), jnp.float32)) + 0.1
    adj = jnp.zeros((N, N), jnp.float32).at[src, dst].add(edge_weight)
    adj = adj + jnp.eye(N, dtype=jnp.float32)                   # self loops

    # Pad the graph to a lane multiple: N is both the adjacency lane dim and the
    # MXU contraction dim; padded rows/cols are exact zeros.
    N_PAD = _round_up(N)
    adj_pad = jnp.zeros((N_PAD, N_PAD), jnp.float32).at[:N, :N].set(adj)
    adj_bf16 = adj_pad.astype(jnp.bfloat16)                     # halve adjacency DMA bytes
    # deg_inv from the SAME bf16-rounded adjacency the kernel streams, so
    # q = (adj @ h) * deg_inv matches row-normalized avg_adj @ h consistently.
    deg = jnp.maximum(adj_bf16.astype(jnp.float32).sum(axis=1, keepdims=True), 1e-6)
    deg_inv = (1.0 / deg).astype(jnp.float32)

    params = init_params(k_par, IN_DIM, HID_DIM, OUT_DIM, NUM_LAYER, GAMMA)

    out = wdecoder_forward(params, enc, adj_bf16, deg_inv, k_noise,
                           num_nodes=N, beta=BETA, skip=True)
    out = jax.block_until_ready(out)
    assert out.shape == (N, OUT_DIM) and out.dtype == jnp.float32
    assert bool(jnp.all(jnp.isfinite(out)))
    print("KERNEL_OK")
</pallas_src>

<mosaic_0001>
module attributes {stable_mosaic.version = 11 : i64} {
  func.func @_copy(%arg0: i32, %arg1: memref<8x128xf32, #tpu.memory_space<vmem>>, %arg2: memref<8x128xf32, #tpu.memory_space<vmem>>) attributes {dimension_semantics = [#tpu.dimension_semantics<arbitrary>], iteration_bounds = array<i64: 1>, scalar_prefetch = 0 : i64, scratch_operands = 0 : i64, tpu.core_type = #tpu.core_type<tc>, window_params = [{pipeline_mode = #tpu.pipeline_mode<synchronous>, transform_indices = @transform_0, window_bounds = array<i64: 8, 128>}, {pipeline_mode = #tpu.pipeline_mode<synchronous>, transform_indices = @transform_1, window_bounds = array<i64: 8, 128>}]} {
    %c0 = arith.constant 0 : index
    %c0_0 = arith.constant 0 : index
    %0 = vector.load %arg1[%c0, %c0_0] : memref<8x128xf32, #tpu.memory_space<vmem>>, vector<8x128xf32>
    %c0_1 = arith.constant 0 : index
    %c0_2 = arith.constant 0 : index
    %1 = vector.load %arg2[%c0_1, %c0_2] : memref<8x128xf32, #tpu.memory_space<vmem>>, vector<8x128xf32>
    tpu.vector_store %arg2[%c0_1, %c0_2], %0 {strides = array<i32>} : memref<8x128xf32, #tpu.memory_space<vmem>>, vector<8x128xf32>,
    return
  }
  func.func @transform_0(%arg0: i32) -> (i32, i32) {
    %c0_i32 = arith.constant 0 : i32
    %c0_i32_0 = arith.constant 0 : i32
    %c0_i32_1 = arith.constant 0 : i32
    return %c0_i32, %c0_i32_0 : i32, i32
  }
  func.func @transform_1(%arg0: i32) -> (i32, i32) {
    %c0_i32 = arith.constant 0 : i32
    %c0_i32_0 = arith.constant 0 : i32
    %c0_i32_1 = arith.constant 0 : i32
    return %c0_i32, %c0_i32_0 : i32, i32
  }
}

module attributes {stable_mosaic.version = 11 : i64} {
  func.func @_linear_kernel(%arg0: i32, %arg1: memref<64x128xf32, #tpu.memory_space<vmem>>, %arg2: memref<128x128xbf16, #tpu.memory_space<vmem>>, %arg3: memref<1x128xf32, #tpu.memory_space<vmem>>, %arg4: memref<64x128xbf16, #tpu.memory_space<vmem>>) attributes {dimension_semantics = [#tpu.dimension_semantics<parallel>], iteration_bounds = array<i64: 2>, scalar_prefetch = 0 : i64, scratch_operands = 0 : i64, tpu.core_type = #tpu.core_type<tc>, window_params = [{transform_indices = @transform_0, window_bounds = array<i64: 64, 128>}, {pipeline_mode = #tpu.pipeline_mode<synchronous>, transform_indices = @transform_1, window_bounds = array<i64: 128, 128>}, {pipeline_mode = #tpu.pipeline_mode<synchronous>, transform_indices = @transform_2, window_bounds = array<i64: 1, 128>}, {transform_indices = @transform_3, window_bounds = array<i64: 64, 128>}]} {
    %c0 = arith.constant 0 : index
    %c0_0 = arith.constant 0 : index
    %0 = vector.load %arg1[%c0, %c0_0] : memref<64x128xf32, #tpu.memory_space<vmem>>, vector<64x128xf32>
    %1 = arith.truncf %0 : vector<64x128xf32> to vector<64x128xbf16>
    %c0_1 = arith.constant 0 : index
    %c0_2 = arith.constant 0 : index
    %2 = vector.load %arg2[%c0_1, %c0_2] : memref<128x128xbf16, #tpu.memory_space<vmem>>, vector<128x128xbf16>
    %cst = arith.constant dense<0.000000e+00> : vector<64x128xf32>
    %3 = tpu.matmul %1, %2, %cst {dimension_numbers = #tpu.dot_dimension_numbers<[1], [0], [0], [1], [0, 0, 1, 1], [], []>} : vector<64x128xbf16>, vector<128x128xbf16>, vector<64x128xf32> -> vector<64x128xf32>
    %c0_3 = arith.constant 0 : index
    %c0_4 = arith.constant 0 : index
    %4 = vector.load %arg3[%c0_3, %c0_4] : memref<1x128xf32, #tpu.memory_space<vmem>>, vector<1x128xf32>
    %5 = vector.broadcast %4 : vector<1x128xf32> to vector<64x128xf32>
    %6 = arith.addf %3, %5 : vector<64x128xf32>
    %7 = arith.truncf %6 : vector<64x128xf32> to vector<64x128xbf16>
    %c0_5 = arith.constant 0 : index
    %c0_6 = arith.constant 0 : index
    %8 = vector.load %arg4[%c0_5, %c0_6] : memref<64x128xbf16, #tpu.memory_space<vmem>>, vector<64x128xbf16>
    tpu.vector_store %arg4[%c0_5, %c0_6], %7 {strides = array<i32>} : memref<64x128xbf16, #tpu.memory_space<vmem>>, vector<64x128xbf16>,
    return
  }
  func.func @transform_0(%arg0: i32) -> (i32, i32) {
    %c0_i32 = arith.constant 0 : i32
    %c0_i32_0 = arith.constant 0 : i32
    return %arg0, %c0_i32 : i32, i32
  }
  func.func @transform_1(%arg0: i32) -> (i32, i32) {
    %c0_i32 = arith.constant 0 : i32
    %c0_i32_0 = arith.constant 0 : i32
    %c0_i32_1 = arith.constant 0 : i32
    return %c0_i32, %c0_i32_0 : i32, i32
  }
  func.func @transform_2(%arg0: i32) -> (i32, i32) {
    %c0_i32 = arith.constant 0 : i32
    %c0_i32_0 = arith.constant 0 : i32
    %c0_i32_1 = arith.constant 0 : i32
    return %c0_i32, %c0_i32_0 : i32, i32
  }
  func.func @transform_3(%arg0: i32) -> (i32, i32) {
    %c0_i32 = arith.constant 0 : i32
    %c0_i32_0 = arith.constant 0 : i32
    return %arg0, %c0_i32 : i32, i32
  }
}

</mosaic_0001>

<bundles_post_ra>
// kernel: tpu_custom_call.1
= control target key start
LH: loop header
LB: loop body
LE: loop exit
PB: predicated region body
PF: predicated region fallthrough
CT: control target
= control target key end

     0   :  { %6 = vsyncpa [#allocation3], 0  ;;  %s124_s0 = inlined_call_operand.hbm [shape: f32[8,128], index: 0, kind: input, shape index: {}]   ;;  %s125_s1 = inlined_call_operand.hbm [shape: f32[8,128], index: 1, kind: output, shape index: {}]  }
   0x1   :  { %7 = vsyncpa [#allocation4], 0  ;;  %s88_s6 = smov [#allocation2]   ;;  %s40_s10 = scalar_lea.hbm %s124_s0, 128 }
   0x2   :  { %s14_s7 = sshll.u32 %s88_s6, 4  ;;  %p41_p0 = scmp.ne.s32.totalorder %s124_s0, %s40_s10  ;;  %s15_s7 = int_to_ptr.vmem [resolvable:$true] %s14_s7 }
   0x3   :  { %p44_p1 = scmp.lt.u32.totalorder %s40_s10, %s124_s0 }
   0x5   :  { %p46_p2 = pnand %p44_p1, %p41_p0 }
   0x7   :  { %49 = shalt.err (!%p46_p2)
}
   0x8   :  { %s50_s15 = scalar_lea.vmem %s15_s7, 128  ;;  %p55_p4 = scmp.lt.s32.totalorder %s15_s7, %s15_s7 }
   0x9   :  { %p51_p3 = scmp.ne.s32.totalorder %s15_s7, %s50_s15  ;;  %p56_p5 = scmp.lt.s32.totalorder %s50_s15, %s50_s15 }
   0xb   :  { %p57_p6 = por %p56_p5, %p55_p4 }
   0xd   :  { %p58_p7 = pnand %p57_p6, %p51_p3 }
   0xf   :  { %61 = shalt.err (!%p58_p7)
}
  0x10   :  { %17 = dma.hbm_to_vmem [thread:$0]  %s124_s0, 128, %s15_s7, [#allocation3]  }
  0x11   :  { %84 = dma.done.wait [#allocation3], 128  }
  0x12   :  { %85 = vsyncadd [#allocation3], 4294967168  ;;  %s89_s18 = smov [#allocation5]   ;;  %v21_v0 = vld [vmem:[#allocation2] sm:$0xff] }
  0x13   :  { %s29_s19 = sshll.u32 %s89_s18, 4  ;;  %22 = vst [vmem:[#allocation5] sm:$0xff] %v21_v0  ;;  %s30_s19 = int_to_ptr.vmem [resolvable:$true] %s29_s19 }
  0x14   :  { %s62_s20 = scalar_lea.vmem %s30_s19, 128  ;;  %p67_p9 = scmp.lt.s32.totalorder %s30_s19, %s30_s19 }
  0x15   :  { %p63_p8 = scmp.ne.s32.totalorder %s30_s19, %s62_s20  ;;  %p68_p10 = scmp.lt.s32.totalorder %s62_s20, %s62_s20 }
  0x17   :  { %p69_p11 = por %p68_p10, %p67_p9 }
  0x19   :  { %p70_p12 = pnand %p69_p11, %p63_p8 }
  0x1b   :  { %73 = shalt.err (!%p70_p12)
}
  0x1c   :  { %s74_s23 = scalar_lea.hbm %s125_s1, 128 }
  0x1d   :  { %p75_p13 = scmp.ne.s32.totalorder %s125_s1, %s74_s23  ;;  %p78_p0 = scmp.lt.u32.totalorder %s74_s23, %s125_s1 }
  0x1f   :  { %p80_p1 = pnand %p78_p0, %p75_p13 }
  0x21   :  { %83 = shalt.err (!%p80_p1)
}
  0x22   :  { %32 = dma.vmem_to_hbm [thread:$0]  %s30_s19, 128, %s125_s1, [#allocation4]  }
  0x23   :  { %86 = dma.done.wait [#allocation4], 128  }
  0x24   :  { %87 = vsyncadd [#allocation4], 4294967168 }
  0x25   :  { %36 = vsyncpa [#allocation3], 1 }
  0x26   :  { %37 = vsyncpa [#allocation4], 1 }

// kernel: tpu_custom_call.1
= control target key start
LH: loop header
LB: loop body
LE: loop exit
PB: predicated region body
PF: predicated region fallthrough
CT: control target
= control target key end

     0   :  { %8 = vsyncpa [#allocation3], 0  ;;  %s1055_s0 = inlined_call_operand.hbm [shape: f32[128,128], index: 0, kind: input, shape index: {}]   ;;  %s1056_s1 = inlined_call_operand.hbm [shape: bf16[128,128], index: 1, kind: input, shape index: {}]   ;;  %s1057_s2 = inlined_call_operand.vmem [shape: f32[1,128], index: 2, kind: input, shape index: {}]   ;;  %s1058_s3 = inlined_call_operand.hbm [shape: bf16[128,128], index: 3, kind: output, shape index: {}]  }
   0x1   :  { %10 = vsyncpa [#allocation3 + $0x1], 0 }
   0x2   :  { %11 = vsyncpa [#allocation6], 0 }
   0x3   :  { %12 = vsyncpa [#allocation4], 0 }
   0x4   :  { %14 = vsyncpa [#allocation4 + $0x1], 0  ;;  %s840_s12 = smov 0   ;;  %s842_s13 = smov 0  }
   0x5   :  { %s844_s14 = smov 0   ;;  %s846_s15 = smov 0  }
   0x6 LB: > { %s861_s16 = sadd.s32 4294967295, %s809_s15   ;;  %s492_s17 = sadd.s32 4294967294, %s809_s15   ;;  %s809_s15 = sphi %s846_s15, %s1078_s15   ;;  %s805_s14 = sphi %s844_s14, %s1077_s14   ;;  %s801_s13 = sphi %s842_s13, %s1076_s13   ;;  %s797_s12 = sphi %s840_s12, %s1075_s12  }
   0x7   : > { %p40_p0 = scmp.ne.s32.totalorder %s801_s13, %s797_s12  ;;  %p1059_p1 = scmp.eq.s32.totalorder %s861_s16, 0 }
   0x8   : > { %p112_p3 = scmp.eq.s32.totalorder %s492_s17, 1  ;;  %p493_p5 = scmp.ge.s32.totalorder %s809_s15, 1 }
   0x9   : > { %p870_p4 = por %p1059_p1, %p40_p0  ;;  %p119_p7 = scmp.lt.s32.totalorder %s809_s15, 3 }
   0xa   : > { %p875_p6 = por %p112_p3, %p40_p0  ;;  %s811_s21 = smov [#allocation5]  }
   0xb   : > { %s1062_s18 = scalar_select %p870_p4, 1, 0 }
   0xc   : > { %s1063_s19 = scalar_select %p875_p6, 1, 0 }
   0xd   : > { %p880_p8 = pnand %p493_p5, %p119_p7  ;;  %s131_s22 = sshll.u32 %s811_s21, 4  ;;  %s884_s22 = int_to_ptr.vmem [resolvable:$true] %s131_s22 }
   0xe   : > { %s896_s24 = sadd.s32 1, %s809_s15   ;;  %s27_s25 = sadd.s32 1, %s805_s14 }
   0xf   : > { %s1064_s20 = scalar_select %p880_p8, 1, 0 }
  0x10   : > { %p618_p9 = pneg %p880_p8  ;;  %s24_s26 = ssub.s32 %s809_s15, %s896_s24 }
  0x11   : > { %s681_s29 = scalar_lea.hbm %s1056_s1, 1024 }
  0x12   : > { %p891_p11 = pnand %p618_p9, %p1059_p1  ;;  %p682_p12 = scmp.ne.s32.totalorder %s1056_s1, %s681_s29 }
  0x13   : > { %p688_p5 = scmp.lt.u32.totalorder %s681_s29, %s1056_s1 }
  0x14   : > { %p683_p13 = pneg %p891_p11 }
  0x16   : > { %p684_p0 = pnand %p683_p13, %p682_p12 }
  0x18   : > { %p685_p3 = pneg %p684_p0 }
  0x1a   : > { %p690_p7 = pnand %p688_p5, %p685_p3 }
  0x1c   : > { %693 = shalt.err (!%p690_p7)
}
  0x1d   : > { %s694_s7 = scalar_lea.vmem %s884_s22, 1024  ;;  %p702_p2 = scmp.lt.s32.totalorder %s884_s22, %s884_s22 }
  0x1e   : > { %p695_p9 = scmp.ne.s32.totalorder %s884_s22, %s694_s7  ;;  %p703_p6 = scmp.lt.s32.totalorder %s694_s7, %s694_s7 }
  0x20   : > { %p697_p10 = pnand %p695_p9, %p683_p13  ;;  %p704_p4 = por %p703_p6, %p702_p2 }
  0x22   : > { %p698_p1 = pneg %p697_p10 }
  0x24   : > { %p705_p8 = pnand %p704_p4, %p698_p1 }
  0x26   : > { %708 = shalt.err (!%p705_p8)
}
  0x27   : > { %s812_s8 = smov 64   ;;  %s813_s9 = smov 4  }
  0x28   : > { %621 = dma.hbm_to_vmem [thread:$0]  (!%p891_p11), %s1056_s1, 1024, %s884_s22, [#allocation6], %s812_s8, %s812_s8, %s813_s9  }
  0x29   : > { %p25_p2 = scmp.eq.s32.totalorder %s24_s26, 0  ;;  %p34_p1 = scmp.ne.s32.totalorder %s805_s14, %s801_s13 }
  0x2a   : > { %p35_p4 = scmp.eq.s32.totalorder %s809_s15, 0  ;;  %p631_p6 = scmp.lt.s32.totalorder %s809_s15, 2 }
  0x2b   : > { %s927_s17 = scalar_select %p25_p2, %s805_s14, %s27_s25  }
  0x2c   : > { %p36_p8 = por %p35_p4, %p34_p1  ;;  %p1066_p10 = scmp.eq.s32.totalorder %s861_s16, 1 }
  0x2d   : > { %s148_s27 = sand.u32 1, %s805_s14   ;;  %s525_s28 = sshll.u32 %s809_s15, 10 }
  0x2e   : > { %p931_p12 = por %p1066_p10, %p34_p1  ;;  %s496_s29 = sshll.u32 %s148_s27, 6 }
  0x2f   : > { %s940_s4 = scalar_lea.hbm %s1055_s0, %s525_s28  ;;  %s152_s22 = scalar_lea.vmem [#allocation2], %s496_s29 }
  0x30   : > { %s159_s25 = sshll.u32 %s152_s22, 4  ;;  %p942_p11 = pnand %p631_p6, %p36_p8  ;;  %s946_s25 = int_to_ptr.vmem [resolvable:$true] %s159_s25 }
  0x31   : > { %s948_s5 = scalar_lea.sflag [#allocation3], %s148_s27  ;;  %s709_s6 = scalar_lea.hbm %s940_s4, 1024 }
  0x32   : > { %p710_p13 = scmp.ne.s32.totalorder %s940_s4, %s709_s6  ;;  %p711_p0 = pneg %p942_p11 }
  0x33   : > { %s714_s9 = scalar_lea.hbm %s1055_s0, 2048  ;;  %p715_p7 = scmp.lt.u32.totalorder %s940_s4, %s1055_s0 }
  0x34   : > { %p712_p3 = pnand %p711_p0, %p710_p13  ;;  %p716_p9 = scmp.lt.u32.totalorder %s714_s9, %s709_s6 }
  0x35   : > { %p718_p1 = scmp.lt.u32.totalorder %s709_s6, %s940_s4 }
  0x36   : > { %p713_p5 = pneg %p712_p3  ;;  %p717_p2 = por %p716_p9, %p715_p7 }
  0x38   : > { %p719_p4 = por %p718_p1, %p717_p2 }
  0x3a   : > { %p720_p6 = pnand %p719_p4, %p713_p5 }
  0x3c   : > { %723 = shalt.err (!%p720_p6)
}
  0x3d   : > { %s724_s27 = scalar_lea.vmem %s946_s25, 1024  ;;  %s814_s28 = smov [#allocation2]  }
  0x3e   : > { %p725_p8 = scmp.ne.s32.totalorder %s946_s25, %s724_s27  ;;  %s729_s29 = sshll.u32 %s814_s28, 4  ;;  %s730_s29 = int_to_ptr.vmem [resolvable:$false] %s729_s29 }
  0x3f   : > { %s731_s23 = scalar_lea.vmem %s730_s29, 2048  ;;  %p732_p3 = scmp.lt.s32.totalorder %s946_s25, %s730_s29 }
  0x40   : > { %p727_p10 = pnand %p725_p8, %p711_p0  ;;  %p733_p7 = scmp.lt.s32.totalorder %s731_s23, %s724_s27 }
  0x42   : > { %p728_p13 = pneg %p727_p10  ;;  %p734_p9 = por %p733_p7, %p732_p3 }
  0x44   : > { %p735_p2 = pnand %p734_p9, %p728_p13 }
  0x46   : > { %738 = shalt.err (!%p735_p2)
}
  0x47   : > { %s815_s30 = smov 128   ;;  %s816_s22 = smov 8  }
  0x48   : > { %625 = dma.hbm_to_vmem [thread:$0]  (!%p942_p11), %s940_s4, 1024, %s946_s25, %s948_s5, %s815_s30, %s815_s30, %s816_s22  }
  0x49   : > { %p1069_p0 = scmp.ne.s32.totalorder %s1064_s20, 0 }
  0x4a   : > { %s979_s6 = sand.u32 (!%p1069_p0), 1, %s801_s13   ;;  %p1070_p5 = scmp.ne.s32.totalorder (!%p1069_p0), %s1062_s18, 0 }
  0x4b   : > { %171 = sbr.rel (%p1069_p0) target bundleno = 353 (0x161), region = 32  ;;  %s500_s7 = sshll.u32 (!%p1069_p0), %s979_s6, 6 }
  0x4c   : > { %s174_s8 = scalar_lea.sflag (!%p1069_p0), [#allocation3], %s979_s6  ;;  %s983_s9 = scalar_lea.vmem (!%p1069_p0), [#allocation2], %s500_s7 }
  0x52   : > { %784 = dma.done.wait (%p1070_p5), %s174_s8, 1024  }
  0x53   : > { %786 = vsyncadd (%p1070_p5), %s174_s8, 4294966272  ;;  %p1071_p11 = scmp.eq.s32.totalorder %s861_s16, 0 }
  0x55   : > { %788 = dma.done.wait (%p1071_p11), [#allocation6], 1024   ;;  %p1072_p1 = pmov %p1071_p11 }
  0x56   : > { %v673_v0 = vld [vmem:[#allocation5] sm:$0xff]   ;;  %v674_v1 = vld [vmem:[#allocation5 + $0x8] sm:$0xff]   ;;  %v675_v2 = vld [vmem:[#allocation5 + $0x10] sm:$0xff]   ;;  %s502_s18 = sshll.u32 %s979_s6, 5  ;;  %s534_s5 = sshll.u32 %s861_s16, 9 }
  0x57   : > { %790 = vsyncadd (%p1072_p1), [#allocation6], 4294966272  ;;  %570 = vmatprep.subr.bf16.mxu0 %v673_v0  ;;  %594 = vmatprep.subr.bf16.mxu1 %v673_v0  ;;  %v676_v3 = vld [vmem:[#allocation5 + $0x18] sm:$0xff]   ;;  %v207_v4 = vld [vmem:[%s983_s9] sm:$0xff]  ;;  %s203_s25 = scalar_lea.vmem [#allocation7], %s502_s18  ;;  %s1011_s11 = scalar_lea.hbm %s1058_s3, %s534_s5 }
  0x58   : > { %571 = vmatpush3.bf16.msra.mxu0 %v673_v0  ;;  %602 = vmatpush3.bf16.msra.mxu1 %v673_v0  ;;  %v208_v5 = vld [vmem:[%s983_s9 + $0x8] sm:$0xff]  ;;  %v211_v6 = vld [vmem:[%s983_s9 + $0x20] sm:$0xff]  ;;  %v679_v12 = vld [vmem:[#allocation5 + $0x30] sm:$0xff]   ;;  %s409_s26 = sshll.u32 %s203_s25, 4  ;;  %s396_s27 = scalar_lea.sflag [#allocation4], %s979_s6  ;;  %s1006_s26 = int_to_ptr.vmem [resolvable:$true] %s409_s26 }
  0x59   : > { %572 = vmatprep.subr.bf16.mxu0 %v674_v1  ;;  %595 = vmatprep.subr.bf16.mxu1 %v674_v1  ;;  %v215_v7 = vpack.c.bf16 %v208_v5, %v207_v4  ;;  %v212_v8 = vld [vmem:[%s983_s9 + $0x28] sm:$0xff]  ;;  %v677_v10 = vld [vmem:[#allocation5 + $0x20] sm:$0xff]   ;;  %v680_v13 = vld [vmem:[#allocation5 + $0x38] sm:$0xff]   ;;  %s739_s28 = scalar_lea.vmem %s1006_s26, 512  ;;  %s817_s29 = smov [#allocation7]  }
  0x5a   : > { %v217_v9 = vpack.c.bf16 %v212_v8, %v211_v6  ;;  %v678_v11 = vld [vmem:[#allocation5 + $0x28] sm:$0xff]   ;;  %v209_v14 = vld [vmem:[%s983_s9 + $0x10] sm:$0xff]  ;;  %v210_v15 = vld [vmem:[%s983_s9 + $0x18] sm:$0xff]  ;;  %p740_p4 = scmp.ne.s32.totalorder %s1006_s26, %s739_s28  ;;  %s743_s23 = sshll.u32 %s817_s29, 4  ;;  %s744_s23 = int_to_ptr.vmem [resolvable:$false] %s743_s23 }
  0x5b   : > { %586 = vmatprep.mubr.bf16.mxu0 %v215_v7  ;;  %v213_v16 = vld [vmem:[%s983_s9 + $0x30] sm:$0xff]  ;;  %v214_v17 = vld [vmem:[%s983_s9 + $0x38] sm:$0xff]  ;;  %v216_v18 = vpack.c.bf16 %v210_v15, %v209_v14  ;;  %v503_v21 = vld [vmem:[%s1057_s2] ss:$0 sm:$0xff]  ;;  %s745_s30 = scalar_lea.vmem %s744_s23, 1024  ;;  %p746_p10 = scmp.lt.s32.totalorder %s1006_s26, %s744_s23 }
  0x5c   : > { %573 = vmatpush3.bf16.msra.mxu0 %v674_v1  ;;  %603 = vmatpush3.bf16.msra.mxu1 %v674_v1  ;;  %v218_v19 = vpack.c.bf16 %v214_v17, %v213_v16  ;;  %p741_p6 = pnand %p740_p4, %p931_p12  ;;  %p747_p13 = scmp.lt.s32.totalorder %s745_s30, %s739_s28 }
  0x5d   : > { %574 = vmatprep.subr.bf16.mxu0 %v675_v2  ;;  %596 = vmatprep.subr.bf16.mxu1 %v675_v2 }
  0x5e   : > { %590 = vmatprep.mubr.bf16.mxu1 %v217_v9  ;;  %p742_p8 = pneg %p741_p6  ;;  %p748_p3 = por %p747_p13, %p746_p10 }
  0x60   : > { %575 = vmatpush3.bf16.msra.mxu0 %v675_v2  ;;  %604 = vmatpush3.bf16.msra.mxu1 %v675_v2  ;;  %p749_p7 = pnand %p748_p3, %p742_p8 }
  0x61   : > { %576 = vmatprep.subr.bf16.mxu0 %v676_v3  ;;  %597 = vmatprep.subr.bf16.mxu1 %v676_v3 }
  0x64   : > { %577 = vmatpush3.bf16.msra.mxu0 %v676_v3  ;;  %605 = vmatpush3.bf16.msra.mxu1 %v676_v3 }
  0x65   : > { %578 = vmatprep.subr.bf16.mxu0 %v677_v10  ;;  %598 = vmatprep.subr.bf16.mxu1 %v677_v10 }
  0x68   : > { %579 = vmatpush3.bf16.msra.mxu0 %v677_v10  ;;  %606 = vmatpush3.bf16.msra.mxu1 %v677_v10 }
  0x69   : > { %580 = vmatprep.subr.bf16.mxu0 %v678_v11  ;;  %599 = vmatprep.subr.bf16.mxu1 %v678_v11 }
  0x6c   : > { %581 = vmatpush3.bf16.msra.mxu0 %v678_v11  ;;  %607 = vmatpush3.bf16.msra.mxu1 %v678_v11 }
  0x6d   : > { %582 = vmatprep.subr.bf16.mxu0 %v679_v12  ;;  %600 = vmatprep.subr.bf16.mxu1 %v679_v12 }
  0x70   : > { %583 = vmatpush3.bf16.msra.mxu0 %v679_v12  ;;  %608 = vmatpush3.bf16.msra.mxu1 %v679_v12 }
  0x71   : > { %584 = vmatprep.subr.bf16.mxu0 %v680_v13  ;;  %601 = vmatprep.subr.bf16.mxu1 %v680_v13 }
  0x74   : > { %585 = vmatpush3.bf16.msra.mxu0 %v680_v13  ;;  %609 = vmatpush3.bf16.msra.mxu1 %v680_v13 }
  0x77   : > { %587 = vmatmul.mubr.bf16.vlgmr.msra.gmra.mrb[0].mxu0 %v216_v18  ;;  %591 = vmatmul.mubr.bf16.vlgmr.msra.gmra.mrb[0].mxu1 %v218_v19 }
 0x14a   : > { %v588_v20 = vpop.f32.mrb[0].mxu0  ;;  %v592_v22 = vpop.f32.mrb[0].mxu1 }
 0x14b   : > { %v324_v23 = vpop.f32.mrb[1].mxu0  ;;  %v340_v24 = vpop.f32.mrb[1].mxu1  ;;  %v333_v27 = vadd.f32 %v588_v20, %v503_v21  ;;  %v349_v28 = vadd.f32 %v592_v22, %v503_v21 }
 0x14c   : > { %v589_v25 = vpop.f32.mrb[2].mxu0  ;;  %v593_v26 = vpop.f32.mrb[2].mxu1  ;;  %v325_v33 = vadd.f32 %v503_v21, %v324_v23  ;;  %v341_v34 = vadd.f32 %v503_v21, %v340_v24 }
 0x14d   : > { %v336_v29 = vadd.f32 %v589_v25, %v503_v21  ;;  %v352_v30 = vadd.f32 %v593_v26, %v503_v21  ;;  %v327_v31 = vpop.f32.mrb[3].mxu0  ;;  %v343_v32 = vpop.f32.mrb[3].mxu1 }
 0x14e   : > { %v328_v35 = vadd.f32 %v503_v21, %v327_v31  ;;  %v344_v36 = vadd.f32 %v503_v21, %v343_v32 }
 0x14f   : > { %v543_v37 = vpack.c.bf16 %v336_v29, %v333_v27  ;;  %v553_v38 = vpack.c.bf16 %v352_v30, %v349_v28 }
 0x150   : > { %v538_v39 = vpack.c.bf16 %v328_v35, %v325_v33  ;;  %v548_v40 = vpack.c.bf16 %v344_v36, %v341_v34 }
 0x151   : > { %555 = vst [vmem:[%s203_s25 + $0x8] sm:$0xff] %v543_v37   ;;  %557 = vst [vmem:[%s203_s25 + $0x18] sm:$0xff] %v553_v38  }
 0x152   : > { %539 = vst [vmem:[%s203_s25] sm:$0xff] %v538_v39   ;;  %556 = vst [vmem:[%s203_s25 + $0x10] sm:$0xff] %v548_v40  }
 0x153   : > { %752 = shalt.err (!%p749_p7)
}
 0x154   : > { %s753_s22 = scalar_lea.hbm %s1011_s11, 512  ;;  %s757_s9 = scalar_lea.hbm %s1058_s3, 1024 }
 0x155   : > { %p754_p9 = scmp.ne.s32.totalorder %s1011_s11, %s753_s22  ;;  %p758_p5 = scmp.lt.u32.totalorder %s1011_s11, %s1058_s3 }
 0x156   : > { %p759_p11 = scmp.lt.u32.totalorder %s757_s9, %s753_s22  ;;  %p761_p4 = scmp.lt.u32.totalorder %s753_s22, %s1011_s11 }
 0x157   : > { %p755_p2 = pnand %p754_p9, %p931_p12 }
 0x158   : > { %p760_p1 = por %p759_p11, %p758_p5 }
 0x159   : > { %p756_p0 = pneg %p755_p2 }
 0x15a   : > { %p762_p6 = por %p761_p4, %p760_p1 }
 0x15c   : > { %p763_p8 = pnand %p762_p6, %p756_p0 }
 0x15e   : > { %766 = shalt.err (!%p763_p8)
}
 0x15f   : > { %s818_s4 = smov 64   ;;  %s819_s25 = smov 4  }
 0x160   : > { %616 = dma.vmem_to_hbm [thread:$0]  (%p931_p12), %s1006_s26, 512, %s1011_s11, %s396_s27, %s818_s4, %s818_s4, %s819_s25  }
 0x161 PF: > { %s424_s5 = sand.u32 1, %s797_s12   ;;  %p1073_p10 = scmp.ne.s32.totalorder %s1063_s19, 0 }
 0x162   : > { %p1074_p13 = scmp.ge.s32.totalorder %s809_s15, 2  ;;  %s425_s10 = scalar_lea.sflag [#allocation4], %s424_s5 }
 0x164   : > { %p627_p3 = pnand %p1074_p13, %p1073_p10 }
 0x166   : > { %792 = dma.done.wait (!%p627_p3), %s425_s10, 512  }
 0x167   : > { %794 = vsyncadd (!%p627_p3), %s425_s10, 4294966784  ;;  %p17_p7 = scmp.ge.s32.totalorder %s896_s24, 4   ;;  %s1075_s12 = smov %s801_s13 }
 0x168   : > { %s1076_s13 = smov %s805_s14  ;;  %s1077_s14 = smov %s927_s17 }
 0x169   : > { %s1078_s15 = smov %s896_s24  ;;  %19 = sbr.rel (!%p17_p7) target bundleno = 6 (0x6), region = 81 }
 0x170   :  { %430 = vsyncpa [#allocation3], 1 }
 0x171   :  { %432 = vsyncpa [#allocation3 + $0x1], 1 }
 0x172   :  { %433 = vsyncpa [#allocation6], 1 }
 0x173   :  { %434 = vsyncpa [#allocation4], 1 }
 0x174   :  { %436 = vsyncpa [#allocation4 + $0x1], 1 }

</bundles_post_ra>
